<compile_context>
chip_gen: v6e
topology: v6e:2x2x1
jax: 0.10.0
libtpu: 0.0.40
codegen_flags: <defaults>
</compile_context>

<pallas_src>
import functools

import jax
import jax.numpy as jnp
from jax.experimental import pallas as pl
from jax.experimental.pallas import tpu as pltpu


def _round_up(x, m):
    return (x + m - 1) // m * m


def _vmem_budget_bytes():
    # ~75% of physical VMEM: ~48 MiB on v7x (64 MiB/TC), ~96 MiB on v5e/v6e.
    try:
        cap = pltpu.get_tpu_info().vmem_capacity_bytes
    except Exception:
        cap = 64 << 20  # conservative fallback, safe on all generations
    return int(cap) * 3 // 4


# ---------------------------- kernels ---------------------------------------

def _mm_bias_act_kernel(lhs_ref, rhs_ref, bias_ref, o_ref, *, act):
    # Single contraction step: (TM, K) x (K, TC) on the MXU with fp32
    # accumulation, fused (scale-folded) BN bias + SiLU epilogue, bf16 store.
    y = jnp.dot(lhs_ref[...], rhs_ref[...], preferred_element_type=jnp.float32)
    y = y + bias_ref[...]
    if act:
        y = y * jax.nn.sigmoid(y)
    o_ref[...] = y.astype(o_ref.dtype)


def _mm_bias_act_kernel_multik(lhs_ref, rhs_ref, bias_ref, o_ref, acc_ref, *,
                               act):
    # Fallback for very deep contractions: fp32 VMEM accumulator across the
    # innermost ("arbitrary") K grid axis.
    @pl.when(pl.program_id(2) == 0)
    def _():
        acc_ref[...] = jnp.zeros_like(acc_ref)

    acc_ref[...] += jnp.dot(lhs_ref[...], rhs_ref[...],
                            preferred_element_type=jnp.float32)

    @pl.when(pl.program_id(2) == pl.num_programs(2) - 1)
    def _():
        y = acc_ref[...] + bias_ref[...]
        if act:
            y = y * jax.nn.sigmoid(y)
        o_ref[...] = y.astype(o_ref.dtype)


# ---------------------------- tile planning ---------------------------------

def _plan_tiles(M, K, Cout, budget):
    """Returns (TM, TC, TK, multi_k)."""
    if Cout >= 512:
        TC = 512
    else:
        TC = _round_up(min(max(Cout, 1), 256), 128)
    K16 = _round_up(K, 16)  # pad K only to sublane packing, not 128

    def single_bytes(TM):
        # double-buffered bf16 lhs/rhs/out tiles + f32 bias strip
        return 2 * (TM * K16 * 2 + K16 * TC * 2 + TM * TC * 2 + TC * 4)

    tm_cands = [t for t in (1024, 512, 256, 128)
                if t <= max(128, _round_up(M, 128))]
    for TM in tm_cands:
        if single_bytes(TM) <= budget * 8 // 10:
            return TM, TC, K16, False

    # Multi-K fallback with f32 accumulator scratch.
    for TK in (2048, 1024, 512):
        for TM in (512, 256, 128):
            b = (2 * (TM * TK * 2 + TK * TC * 2 + TM * TC * 2 + TC * 4)
                 + TM * TC * 4)
            if b <= budget * 8 // 10:
                return TM, TC, TK, True
    return 128, TC, 512, True


# ---------------------------- wrapper ----------------------------------------

@functools.partial(jax.jit,
                   static_argnames=("stride", "padding", "groups", "act", "eps"))
def conv_bn_act(x_nchw, weight, gamma, beta, running_mean, running_var, *,
                stride=1, padding=None, groups=1, act=True, eps=1e-5):
    # TODO(synk): groups > 1 and training-mode (batch-stat) BatchNorm are not
    #             implemented; eval-mode g=1 path only.
    assert groups == 1, "groups > 1 not implemented"
    N, Cin, H, W = x_nchw.shape
    Cout, Cin_w, k, k2 = weight.shape
    assert k == k2 and Cin_w == Cin, "only groups=1 supported"
    pad = k // 2 if padding is None else padding
    Ho = (H + 2 * pad - k) // stride + 1
    Wo = (W + 2 * pad - k) // stride + 1
    M = N * Ho * Wo
    K = k * k * Cin

    # Fold eval-mode BatchNorm: scale into the weight columns, bias separate.
    inv = gamma.astype(jnp.float32) * jax.lax.rsqrt(
        running_var.astype(jnp.float32) + eps)
    bias = beta.astype(jnp.float32) - running_mean.astype(jnp.float32) * inv
    w = weight.astype(jnp.float32) * inv[:, None, None, None]
    # (Cout, Cin, kh, kw) -> (kh*kw*Cin, Cout); row order matches taps below.
    rhs = jnp.transpose(w, (2, 3, 1, 0)).reshape(K, Cout).astype(jnp.bfloat16)

    budget = _vmem_budget_bytes()
    TM, TC, TK, multi_k = _plan_tiles(M, K, Cout, budget)

    C_p = _round_up(Cout, TC)
    # Keep >= 2 parallel programs so both TensorCores are busy on v7x.
    while (pl.cdiv(M, TM) * (C_p // TC)) < 2 and TM > 128:
        TM //= 2
    M_p = _round_up(M, TM)
    K_p = _round_up(K, TK) if multi_k else TK  # single-K: TK == K16 (full dim)

    # ---- wrapper-side layout plumbing (fused under jit) ----
    # NCHW -> NHWC in bf16, spatial zero pad, im2col taps (+ fused K zero pad).
    x = jnp.transpose(x_nchw.astype(jnp.bfloat16), (0, 2, 3, 1))
    x = jnp.pad(x, ((0, 0), (pad, pad), (pad, pad), (0, 0)))
    taps = []
    for i in range(k):
        for j in range(k):
            taps.append(x[:, i:i + (Ho - 1) * stride + 1:stride,
                            j:j + (Wo - 1) * stride + 1:stride, :])
    if K_p > K:
        taps.append(jnp.zeros((N, Ho, Wo, K_p - K), jnp.bfloat16))
    lhs = jnp.concatenate(taps, axis=-1).reshape(M, K_p)
    if M_p > M:
        lhs = jnp.pad(lhs, ((0, M_p - M), (0, 0)))

    rhs_p = jnp.pad(rhs, ((0, K_p - K), (0, C_p - Cout)))
    bias_p = jnp.pad(bias.reshape(1, Cout), ((0, 0), (0, C_p - Cout)))

    cost = pl.CostEstimate(
        flops=2 * M * K * Cout,
        transcendentals=(M * Cout) if act else 0,
        bytes_accessed=(M_p * K_p + K_p * C_p + M_p * C_p) * 2,
    )
    cparams_common = dict(vmem_limit_bytes=int(budget))

    if not multi_k:
        out = pl.pallas_call(
            functools.partial(_mm_bias_act_kernel, act=act),
            out_shape=jax.ShapeDtypeStruct((M_p, C_p), jnp.bfloat16),
            grid=(M_p // TM, C_p // TC),
            in_specs=[
                pl.BlockSpec((TM, K_p), lambda m, c: (m, 0)),
                pl.BlockSpec((K_p, TC), lambda m, c: (0, c)),
                pl.BlockSpec((1, TC), lambda m, c: (0, c)),
            ],
            out_specs=pl.BlockSpec((TM, TC), lambda m, c: (m, c)),
            compiler_params=pltpu.CompilerParams(
                dimension_semantics=("parallel", "parallel"),
                **cparams_common),
            cost_estimate=cost,
        )(lhs, rhs_p, bias_p)
    else:
        out = pl.pallas_call(
            functools.partial(_mm_bias_act_kernel_multik, act=act),
            out_shape=jax.ShapeDtypeStruct((M_p, C_p), jnp.bfloat16),
            grid=(M_p // TM, C_p // TC, K_p // TK),
            in_specs=[
                pl.BlockSpec((TM, TK), lambda m, c, kk: (m, kk)),
                pl.BlockSpec((TK, TC), lambda m, c, kk: (kk, c)),
                pl.BlockSpec((1, TC), lambda m, c, kk: (0, c)),
            ],
            out_specs=pl.BlockSpec((TM, TC), lambda m, c, kk: (m, c)),
            scratch_shapes=[pltpu.VMEM((TM, TC), jnp.float32)],
            compiler_params=pltpu.CompilerParams(
                dimension_semantics=("parallel", "parallel", "arbitrary"),
                **cparams_common),
            cost_estimate=cost,
        )(lhs, rhs_p, bias_p)

    # Un-pad, back to PyTorch's NCHW convention (kept in bf16; downstream YOLO
    # layers consume bf16 anyway).
    out = out[:M, :Cout].reshape(N, Ho, Wo, Cout)
    return jnp.transpose(out, (0, 3, 1, 2))


# ---------------------------- reference & test --------------------------------

def _reference(x_nchw, weight, gamma, beta, running_mean, running_var, *,
               stride=1, padding=None, act=True, eps=1e-5):
    k = weight.shape[-1]
    pad = k // 2 if padding is None else padding
    y = jax.lax.conv_general_dilated(
        x_nchw, weight,
        window_strides=(stride, stride),
        padding=[(pad, pad), (pad, pad)],
        dimension_numbers=("NCHW", "OIHW", "NCHW"))
    s = (gamma / jnp.sqrt(running_var + eps)).reshape(1, -1, 1, 1)
    b = (beta - running_mean * gamma / jnp.sqrt(running_var + eps)).reshape(
        1, -1, 1, 1)
    y = y * s + b
    if act:
        y = y * jax.nn.sigmoid(y)
    return y


def _check(key, N, Cin, H, W, Cout, k, stride, act):
    kx, kw, kg, kb, km, kv = jax.random.split(key, 6)
    x = jax.random.normal(kx, (N, Cin, H, W), dtype=jnp.float32)
    weight = jax.random.normal(kw, (Cout, Cin, k, k), dtype=jnp.float32) * 0.1
    gamma = 1.0 + 0.1 * jax.random.normal(kg, (Cout,), dtype=jnp.float32)
    beta = 0.1 * jax.random.normal(kb, (Cout,), dtype=jnp.float32)
    running_mean = 0.1 * jax.random.normal(km, (Cout,), dtype=jnp.float32)
    running_var = 1.0 + 0.1 * jax.random.uniform(kv, (Cout,), dtype=jnp.float32)

    out = conv_bn_act(x, weight, gamma, beta, running_mean, running_var,
                      stride=stride, act=act)
    out = jax.block_until_ready(out).astype(jnp.float32)
    ref = _reference(x, weight, gamma, beta, running_mean, running_var,
                     stride=stride, act=act)
    ref = jax.block_until_ready(ref)

    assert out.shape == ref.shape, (out.shape, ref.shape)
    # bf16 MXU operands / bf16 output -> looser tolerance than fp32 parity.
    err = float(jnp.max(jnp.abs(out - ref)))
    assert jnp.allclose(out, ref, atol=3e-2, rtol=3e-2), err


if __name__ == "__main__":
    key = jax.random.PRNGKey(0)
    k1, k2, k3 = jax.random.split(key, 3)

    # Standard 3x3 stride-1 Conv+BN+SiLU (stem-like small Cin).
    _check(k1, N=2, Cin=4, H=16, W=16, Cout=8, k=3, stride=1, act=True)
    # Downsampling 3x3 stride-2 Conv+BN (act=False path).
    _check(k2, N=2, Cin=4, H=16, W=16, Cout=16, k=3, stride=2, act=False)
    # 1x1 pointwise Conv+BN+SiLU (default k=1 of the module).
    _check(k3, N=2, Cin=8, H=16, W=16, Cout=32, k=1, stride=1, act=True)

    print("KERNEL_OK")
</pallas_src>

<mosaic_0001>
module attributes {stable_mosaic.version = 11 : i64} {
  func.func @_mm_bias_act_kernel(%arg0: i32, %arg1: i32, %arg2: memref<256x48xbf16, #tpu.memory_space<vmem>>, %arg3: memref<48x128xbf16, #tpu.memory_space<vmem>>, %arg4: memref<1x128xf32, #tpu.memory_space<vmem>>, %arg5: memref<256x128xbf16, #tpu.memory_space<vmem>>) attributes {dimension_semantics = [#tpu.dimension_semantics<parallel>, #tpu.dimension_semantics<parallel>], iteration_bounds = array<i64: 2, 1>, scalar_prefetch = 0 : i64, scratch_operands = 0 : i64, tpu.core_type = #tpu.core_type<tc>, window_params = [{transform_indices = @transform_0, window_bounds = array<i64: 256, 48>}, {transform_indices = @transform_1, window_bounds = array<i64: 48, 128>}, {transform_indices = @transform_2, window_bounds = array<i64: 1, 128>}, {transform_indices = @transform_3, window_bounds = array<i64: 256, 128>}]} {
    %c0 = arith.constant 0 : index
    %c0_0 = arith.constant 0 : index
    %0 = vector.load %arg2[%c0, %c0_0] : memref<256x48xbf16, #tpu.memory_space<vmem>>, vector<256x48xbf16>
    %c0_1 = arith.constant 0 : index
    %c0_2 = arith.constant 0 : index
    %1 = vector.load %arg3[%c0_1, %c0_2] : memref<48x128xbf16, #tpu.memory_space<vmem>>, vector<48x128xbf16>
    %cst = arith.constant dense<0.000000e+00> : vector<256x128xf32>
    %2 = tpu.matmul %0, %1, %cst {dimension_numbers = #tpu.dot_dimension_numbers<[1], [0], [0], [1], [0, 0, 1, 1], [], []>} : vector<256x48xbf16>, vector<48x128xbf16>, vector<256x128xf32> -> vector<256x128xf32>
    %c0_3 = arith.constant 0 : index
    %c0_4 = arith.constant 0 : index
    %3 = vector.load %arg4[%c0_3, %c0_4] : memref<1x128xf32, #tpu.memory_space<vmem>>, vector<1x128xf32>
    %4 = vector.broadcast %3 : vector<1x128xf32> to vector<256x128xf32>
    %5 = arith.addf %2, %4 : vector<256x128xf32>
    %6 = arith.negf %5 : vector<256x128xf32>
    %7 = math.exp %6 : vector<256x128xf32>
    %cst_5 = arith.constant 1.000000e+00 : f32
    %8 = vector.broadcast %cst_5 : f32 to vector<256x128xf32>
    %9 = arith.addf %8, %7 : vector<256x128xf32>
    %10 = arith.divf %8, %9 : vector<256x128xf32>
    %11 = arith.mulf %5, %10 : vector<256x128xf32>
    %12 = arith.truncf %11 : vector<256x128xf32> to vector<256x128xbf16>
    %c0_6 = arith.constant 0 : index
    %c0_7 = arith.constant 0 : index
    %13 = vector.load %arg5[%c0_6, %c0_7] : memref<256x128xbf16, #tpu.memory_space<vmem>>, vector<256x128xbf16>
    tpu.vector_store %arg5[%c0_6, %c0_7], %12 {strides = array<i32>} : memref<256x128xbf16, #tpu.memory_space<vmem>>, vector<256x128xbf16>,
    return
  }
  func.func @transform_0(%arg0: i32, %arg1: i32) -> (i32, i32) {
    %c0_i32 = arith.constant 0 : i32
    %c0_i32_0 = arith.constant 0 : i32
    return %arg0, %c0_i32 : i32, i32
  }
  func.func @transform_1(%arg0: i32, %arg1: i32) -> (i32, i32) {
    %c0_i32 = arith.constant 0 : i32
    %c0_i32_0 = arith.constant 0 : i32
    return %c0_i32, %arg1 : i32, i32
  }
  func.func @transform_2(%arg0: i32, %arg1: i32) -> (i32, i32) {
    %c0_i32 = arith.constant 0 : i32
    %c0_i32_0 = arith.constant 0 : i32
    return %c0_i32, %arg1 : i32, i32
  }
  func.func @transform_3(%arg0: i32, %arg1: i32) -> (i32, i32) {
    %c0_i32 = arith.constant 0 : i32
    return %arg0, %arg1 : i32, i32
  }
}

</mosaic_0001>

<bundles_post_ra>
// kernel: conv_bn_act.1
= control target key start
LH: loop header
LB: loop body
LE: loop exit
PB: predicated region body
PF: predicated region fallthrough
CT: control target
= control target key end

     0   :  { %s1583_s12 = smov 0   ;;  %s1585_s13 = smov 0   ;;  %s1849_s0 = inlined_call_operand.vmem [shape: bf16[512,48], index: 0, kind: input, shape index: {}]   ;;  %s1850_s1 = inlined_call_operand.vmem [shape: bf16[48,128], index: 1, kind: input, shape index: {}]   ;;  %s1851_s2 = inlined_call_operand.vmem [shape: f32[1,128], index: 2, kind: input, shape index: {}]   ;;  %s1852_s3 = inlined_call_operand.vmem [shape: bf16[512,128], index: 3, kind: output, shape index: {}]  }
   0x1   :  { %s1587_s14 = smov 0  }
   0x2 LB: > { %s25_s15 = sadd.s32 1, %s1557_s13  ;;  %p1071_p0 = scmp.ge.s32.totalorder %s1561_s14, 1  ;;  %s1561_s14 = sphi %s1587_s14, %s13_s14   ;;  %s1557_s13 = sphi %s1585_s13, %s1854_s13   ;;  %s1553_s12 = sphi %s1583_s12, %s1853_s12  }
   0x3   : > { %p27_p1 = scmp.ge.s32.totalorder %s25_s15, 2  ;;  %p169_p2 = scmp.lt.s32.totalorder %s1561_s14, 3 }
   0x5   : > { %s1856_s15 = smov (%p27_p1, %s25_s15), 0  ;;  %p170_p3 = pnand %p1071_p0, %p169_p2 }
   0x6   : > { %s1072_s18 = sshll.u32 (!%p170_p3), %s1553_s12, 5 }
   0x7   : > { %173 = sbr.rel (%p170_p3) target bundleno = 304 (0x130), region = 32  ;;  %p204_p4 = scmp.lt.s32.totalorder (!%p170_p3), %s1072_s18, 63 }
   0xc   : > { %v1392_v0 = vld [vmem:[%s1850_s1 + $0x10] sm:$0xff]   ;;  %v1393_v1 = vld [vmem:[%s1850_s1 + $0x8] sm:$0xff]   ;;  %s1858_s18 = smov (!%p204_p4, %s1072_s18), 63  ;;  %v1394_v2 = vld [vmem:[%s1850_s1] sm:$0xff]   ;;  %vm369_vm0 = vcmask 392192  }
   0xd   : > { %1324 = vmatprep.subr.bf16.mxu0 %v1392_v0  ;;  %1362 = vmatprep.subr.bf16.mxu1 %v1392_v0  ;;  %s1073_s23 = sshll.u32 %s1858_s18, 2  ;;  %v1655_v19 = vld [vmem:[%s1851_s2] ss:$0 sm:$0xff] }
   0xe   : > { %1325 = vmatpush3.bf16.msra.mxu0 %v1392_v0  ;;  %1365 = vmatpush3.bf16.msra.mxu1 %v1392_v0  ;;  %s1618_s26 = scalar_lea.vmem %s1849_s0, %s1073_s23  ;;  %s1778_s4 = scalar_lea.vmem %s1852_s3, %s1073_s23 }
   0xf   : > { %1326 = vmatprep.subr.bf16.mxu0 %v1393_v1  ;;  %1363 = vmatprep.subr.bf16.mxu1 %v1393_v1  ;;  %v1395_v3 = vld [vmem:[%s1618_s26] sm:$0xff]   ;;  %v1397_v5 = vld [vmem:[%s1618_s26 + $0x8] sm:$0xff]   ;;  %v1399_v7 = vld [vmem:[%s1618_s26 + $0x10] sm:$0xff]  }
  0x10   : > { %v1396_v4 = vld [vmem:[%s1618_s26 + $0x40] sm:$0xff]   ;;  %1330 = vmatprep.mubr.msk.bf16.mxu0 %vm369_vm0, %v1395_v3  ;;  %v1398_v6 = vld [vmem:[%s1618_s26 + $0x48] sm:$0xff]   ;;  %v1400_v8 = vld [vmem:[%s1618_s26 + $0x50] sm:$0xff]  }
  0x11   : > { %1346 = vmatprep.mubr.msk.bf16.mxu1 %vm369_vm0, %v1396_v4  ;;  %v1401_v9 = vld [vmem:[%s1618_s26 + $0x18] sm:$0xff]   ;;  %v1403_v11 = vld [vmem:[%s1618_s26 + $0x20] sm:$0xff]   ;;  %v1405_v13 = vld [vmem:[%s1618_s26 + $0x28] sm:$0xff]  }
  0x12   : > { %1327 = vmatpush3.bf16.msra.mxu0 %v1393_v1  ;;  %1366 = vmatpush3.bf16.msra.mxu1 %v1393_v1  ;;  %v1402_v10 = vld [vmem:[%s1618_s26 + $0x58] sm:$0xff]   ;;  %v1404_v12 = vld [vmem:[%s1618_s26 + $0x60] sm:$0xff]   ;;  %v1406_v14 = vld [vmem:[%s1618_s26 + $0x68] sm:$0xff]  }
  0x13   : > { %1328 = vmatprep.subr.bf16.mxu0 %v1394_v2  ;;  %1364 = vmatprep.subr.bf16.mxu1 %v1394_v2  ;;  %v1407_v15 = vld [vmem:[%s1618_s26 + $0x30] sm:$0xff]   ;;  %v1409_v17 = vld [vmem:[%s1618_s26 + $0x38] sm:$0xff]  }
  0x14   : > { %v1408_v16 = vld [vmem:[%s1618_s26 + $0x70] sm:$0xff]   ;;  %v1410_v18 = vld [vmem:[%s1618_s26 + $0x78] sm:$0xff]  }
  0x16   : > { %1329 = vmatpush3.bf16.msra.mxu0 %v1394_v2  ;;  %1367 = vmatpush3.bf16.msra.mxu1 %v1394_v2 }
  0x19   : > { %1331 = vmatmul.mubr.msk.bf16.vlgmr.msra.gmra.mxu0 %vm369_vm0, %v1397_v5  ;;  %1347 = vmatmul.mubr.msk.bf16.vlgmr.msra.gmra.mxu1 %vm369_vm0, %v1398_v6 }
  0x1a   : > { %1334 = vmatprep.mubr.msk.bf16.mxu0 %vm369_vm0, %v1399_v7  ;;  %1350 = vmatprep.mubr.msk.bf16.mxu1 %vm369_vm0, %v1400_v8 }
  0x21   : > { %1335 = vmatmul.mubr.msk.bf16.gmra.mxu0 %vm369_vm0, %v1401_v9  ;;  %1351 = vmatmul.mubr.msk.bf16.gmra.mxu1 %vm369_vm0, %v1402_v10 }
  0x22   : > { %1338 = vmatprep.mubr.msk.bf16.mxu0 %vm369_vm0, %v1403_v11  ;;  %1354 = vmatprep.mubr.msk.bf16.mxu1 %vm369_vm0, %v1404_v12 }
  0x29   : > { %1339 = vmatmul.mubr.msk.bf16.gmra.mxu0 %vm369_vm0, %v1405_v13  ;;  %1355 = vmatmul.mubr.msk.bf16.gmra.mxu1 %vm369_vm0, %v1406_v14 }
  0x2a   : > { %1342 = vmatprep.mubr.msk.bf16.mxu0 %vm369_vm0, %v1407_v15  ;;  %1358 = vmatprep.mubr.msk.bf16.mxu1 %vm369_vm0, %v1408_v16 }
  0x31   : > { %1343 = vmatmul.mubr.msk.bf16.gmra.mxu0 %vm369_vm0, %v1409_v17  ;;  %1359 = vmatmul.mubr.msk.bf16.gmra.mxu1 %vm369_vm0, %v1410_v18 }
  0xd9   : > { %v1332_v20 = vpop.f32.mrf.mxu0  ;;  %v1348_v21 = vpop.f32.mrf.mxu1 }
  0xda   : > { %v1658_v22 = vadd.f32 %v1332_v20, %v1655_v19  ;;  %v1661_v23 = vadd.f32 %v1348_v21, %v1655_v19 }
  0xdb   : > { %v452_v24 = vpop.f32.mrf.mxu0  ;;  %v516_v25 = vpop.f32.mrf.mxu1 }
  0xdc   : > { %v1114_v26 = vmul.f32 -1.442695, %v1658_v22  ;;  %v1130_v27 = vmul.f32 -1.442695, %v1661_v23  ;;  %v1666_v28 = vadd.f32 %v1655_v19, %v452_v24  ;;  %v1669_v29 = vadd.f32 %v1655_v19, %v516_v25 }
  0xdd   : > { %v1333_v30 = vpop.f32.mrf.mxu0  ;;  %v1349_v31 = vpop.f32.mrf.mxu1 }
  0xde   : > { %1411 = vpow2.f32 %v1114_v26  ;;  %v1112_v32 = vmul.f32 -1.442695, %v1666_v28  ;;  %v1128_v33 = vmul.f32 -1.442695, %v1669_v29  ;;  %v1674_v34 = vadd.f32 %v1333_v30, %v1655_v19 }
  0xdf   : > { %1413 = vpow2.f32 %v1130_v27  ;;  %v1677_v35 = vadd.f32 %v1349_v31, %v1655_v19  ;;  %v455_v36 = vpop.f32.mrf.mxu0  ;;  %v519_v37 = vpop.f32.mrf.mxu1 }
  0xe0   : > { %1415 = vpow2.f32 %v1112_v32  ;;  %v1115_v38 = vmul.f32 -1.442695, %v1674_v34  ;;  %v1681_v39 = vadd.f32 %v1655_v19, %v455_v36  ;;  %v1684_v40 = vadd.f32 %v1655_v19, %v519_v37 }
  0xe1   : > { %1417 = vpow2.f32 %v1128_v33  ;;  %v1131_v41 = vmul.f32 -1.442695, %v1677_v35  ;;  %v1336_v42 = vpop.f32.mrf.mxu0  ;;  %v1352_v43 = vpop.f32.mrf.mxu1 }
  0xe2   : > { %1419 = vpow2.f32 %v1115_v38  ;;  %v1113_v44 = vmul.f32 -1.442695, %v1681_v39  ;;  %v1129_v45 = vmul.f32 -1.442695, %v1684_v40  ;;  %v1690_v46 = vadd.f32 %v1336_v42, %v1655_v19 }
  0xe3   : > { %1421 = vpow2.f32 %v1131_v41  ;;  %v1693_v47 = vadd.f32 %v1352_v43, %v1655_v19  ;;  %v468_v48 = vpop.f32.mrf.mxu0  ;;  %v532_v49 = vpop.f32.mrf.mxu1 }
  0xe4   : > { %1423 = vpow2.f32 %v1113_v44  ;;  %v1118_v50 = vmul.f32 -1.442695, %v1690_v46  ;;  %v1697_v51 = vadd.f32 %v1655_v19, %v468_v48  ;;  %v1700_v52 = vadd.f32 %v1655_v19, %v532_v49 }
  0xe5   : > { %1425 = vpow2.f32 %v1129_v45  ;;  %v1134_v53 = vmul.f32 -1.442695, %v1693_v47  ;;  %v1337_v54 = vpop.f32.mrf.mxu0  ;;  %v1353_v55 = vpop.f32.mrf.mxu1 }
  0xe6   : > { %1427 = vpow2.f32 %v1118_v50  ;;  %v1116_v56 = vmul.f32 -1.442695, %v1697_v51  ;;  %v1132_v57 = vmul.f32 -1.442695, %v1700_v52  ;;  %v1706_v58 = vadd.f32 %v1337_v54, %v1655_v19 }
  0xe7   : > { %1429 = vpow2.f32 %v1134_v53  ;;  %v1709_v59 = vadd.f32 %v1353_v55, %v1655_v19  ;;  %v471_v60 = vpop.f32.mrf.mxu0  ;;  %v535_v61 = vpop.f32.mrf.mxu1 }
  0xe8   : > { %1431 = vpow2.f32 %v1116_v56  ;;  %v1119_v62 = vmul.f32 -1.442695, %v1706_v58  ;;  %v1713_v63 = vadd.f32 %v1655_v19, %v471_v60  ;;  %v1716_v0 = vadd.f32 %v1655_v19, %v535_v61 }
  0xe9   : > { %1433 = vpow2.f32 %v1132_v57  ;;  %v1135_v1 = vmul.f32 -1.442695, %v1709_v59  ;;  %v1340_v2 = vpop.f32.mrf.mxu0  ;;  %v1356_v3 = vpop.f32.mrf.mxu1 }
  0xea   : > { %1435 = vpow2.f32 %v1119_v62  ;;  %v1117_v4 = vmul.f32 -1.442695, %v1713_v63  ;;  %v1133_v5 = vmul.f32 -1.442695, %v1716_v0  ;;  %v1722_v36 = vadd.f32 %v1340_v2, %v1655_v19 }
  0xeb   : > { %v1412_v6 = vpop.eup %1411  ;;  %1437 = vpow2.f32 %v1135_v1  ;;  %v484_v7 = vpop.f32.mrf.mxu0  ;;  %v1725_v48 = vadd.f32 %v1356_v3, %v1655_v19 }
  0xec   : > { %v548_v8 = vpop.f32.mrf.mxu1  ;;  %v1414_v9 = vpop.eup %1413  ;;  %v677_v10 = vadd.f32 1.0, %v1412_v6  ;;  %1439 = vpow2.f32 %v1117_v4  ;;  %v1122_v54 = vmul.f32 -1.442695, %v1722_v36  ;;  %v1729_v55 = vadd.f32 %v1655_v19, %v484_v7 }
  0xed   : > { %v1416_v11 = vpop.eup %1415  ;;  %v693_v12 = vadd.f32 1.0, %v1414_v9  ;;  %1441 = vpow2.f32 %v1133_v5  ;;  %v1341_v13 = vpop.f32.mrf.mxu0  ;;  %v1732_v60 = vadd.f32 %v1655_v19, %v548_v8 }
  0xee   : > { %v1418_v14 = vpop.eup %1417  ;;  %1443 = vrcp.f32 %v677_v10  ;;  %v675_v15 = vadd.f32 1.0, %v1416_v11  ;;  %v1357_v16 = vpop.f32.mrf.mxu1  ;;  %v1735_v61 = vadd.f32 %v1341_v13, %v1655_v19 }
  0xef   : > { %v1420_v17 = vpop.eup %1419  ;;  %1445 = vrcp.f32 %v693_v12  ;;  %v691_v18 = vadd.f32 1.0, %v1418_v14  ;;  %v487_v26 = vpop.f32.mrf.mxu0  ;;  %v1738_v2 = vadd.f32 %v1357_v16, %v1655_v19  ;;  %v1138_v12 = vmul.f32 -1.442695, %v1725_v48 }
  0xf0   : > { %v1422_v20 = vpop.eup %1421  ;;  %1447 = vrcp.f32 %v675_v15  ;;  %v678_v21 = vadd.f32 1.0, %v1420_v17  ;;  %v551_v31 = vpop.f32.mrf.mxu1  ;;  %v1741_v3 = vadd.f32 %v1655_v19, %v487_v26  ;;  %v1120_v15 = vmul.f32 -1.442695, %v1729_v55 }
  0xf1   : > { %v1424_v24 = vpop.eup %1423  ;;  %1449 = vrcp.f32 %v691_v18  ;;  %v694_v25 = vadd.f32 1.0, %v1422_v20  ;;  %v1344_v43 = vpop.f32.mrf.mxu0  ;;  %v1744_v7 = vadd.f32 %v1655_v19, %v551_v31  ;;  %v1136_v17 = vmul.f32 -1.442695, %v1732_v60 }
  0xf2   : > { %v1426_v27 = vpop.eup %1425  ;;  %1451 = vrcp.f32 %v678_v21  ;;  %v676_v30 = vadd.f32 1.0, %v1424_v24  ;;  %v1360_v49 = vpop.f32.mrf.mxu1  ;;  %v1747_v8 = vadd.f32 %v1344_v43, %v1655_v19  ;;  %v1123_v18 = vmul.f32 -1.442695, %v1735_v61 }
  0xf3   : > { %v1428_v32 = vpop.eup %1427  ;;  %1453 = vrcp.f32 %v694_v25  ;;  %v692_v33 = vadd.f32 1.0, %v1426_v27  ;;  %v500_v4 = vpop.f32.mrf.mxu0  ;;  %v1751_v13 = vadd.f32 %v1360_v49, %v1655_v19  ;;  %v1139_v20 = vmul.f32 -1.442695, %v1738_v2 }
  0xf4   : > { %v1430_v37 = vpop.eup %1429  ;;  %1455 = vrcp.f32 %v676_v30  ;;  %v681_v38 = vadd.f32 1.0, %v1428_v32  ;;  %v564_v9 = vpop.f32.mrf.mxu1  ;;  %v1121_v25 = vmul.f32 -1.442695, %v1741_v3  ;;  %v1137_v26 = vmul.f32 -1.442695, %v1744_v7 }
  0xf5   : > { %v1432_v41 = vpop.eup %1431  ;;  %1457 = vrcp.f32 %v692_v33  ;;  %v697_v42 = vadd.f32 1.0, %v1430_v37  ;;  %v1345_v21 = vpop.f32.mrf.mxu0  ;;  %v1126_v27 = vmul.f32 -1.442695, %v1747_v8  ;;  %v1142_v32 = vmul.f32 -1.442695, %v1751_v13 }
  0xf6   : > { %v1434_v44 = vpop.eup %1433  ;;  %1459 = vrcp.f32 %v681_v38  ;;  %v679_v45 = vadd.f32 1.0, %v1432_v41  ;;  %v1361_v30 = vpop.f32.mrf.mxu1  ;;  %v1762_v33 = vadd.f32 %v1655_v19, %v500_v4  ;;  %v1765_v37 = vadd.f32 %v1655_v19, %v564_v9 }
  0xf7   : > { %v1436_v50 = vpop.eup %1435  ;;  %1461 = vrcp.f32 %v697_v42  ;;  %v695_v53 = vadd.f32 1.0, %v1434_v44  ;;  %v1770_v43 = vadd.f32 %v1345_v21, %v1655_v19 }
  0xf8   : > { %v1438_v56 = vpop.eup %1437  ;;  %1463 = vrcp.f32 %v679_v45  ;;  %v682_v57 = vadd.f32 1.0, %v1436_v50 }
  0xf9   : > { %v1440_v62 = vpop.eup %1439  ;;  %1465 = vrcp.f32 %v695_v53  ;;  %v698_v1 = vadd.f32 1.0, %v1438_v56  ;;  %v567_v56 = vpop.f32.mrf.mxu1 }
  0xfa   : > { %v1442_v5 = vpop.eup %1441  ;;  %1467 = vrcp.f32 %v682_v57  ;;  %v680_v6 = vadd.f32 1.0, %v1440_v62 }
  0xfb   : > { %v1444_v10 = vpop.eup %1443  ;;  %1469 = vrcp.f32 %v698_v1  ;;  %v696_v11 = vadd.f32 1.0, %v1442_v5 }
  0xfc   : > { %v1446_v14 = vpop.eup %1445  ;;  %1471 = vrcp.f32 %v680_v6  ;;  %v773_v41 = vmul.f32 %v1444_v10, %v1658_v22  ;;  %v1782_v22 = vadd.f32 %v1361_v30, %v1655_v19  ;;  %v1796_v10 = vadd.f32 %v1655_v19, %v567_v56 }
  0xfd   : > { %v1448_v16 = vpop.eup %1447  ;;  %1473 = vrcp.f32 %v696_v11  ;;  %v789_v45 = vmul.f32 %v1446_v14, %v1661_v23  ;;  %v1127_v11 = vmul.f32 -1.442695, %v1770_v43 }
  0xfe   : > { %v1450_v24 = vpop.eup %1449  ;;  %1475 = vpow2.f32 %v1122_v54  ;;  %v771_v53 = vmul.f32 %v1448_v16, %v1666_v28  ;;  %v1124_v28 = vmul.f32 -1.442695, %v1762_v33  ;;  %v1143_v14 = vmul.f32 -1.442695, %v1782_v22 }
  0xff   : > { %v1452_v31 = vpop.eup %1451  ;;  %1477 = vpow2.f32 %v1138_v12  ;;  %v787_v62 = vmul.f32 %v1450_v24, %v1669_v29  ;;  %v1140_v29 = vmul.f32 -1.442695, %v1765_v37  ;;  %v1141_v24 = vmul.f32 -1.442695, %v1796_v10 }
 0x100   : > { %v1454_v38 = vpop.eup %1453  ;;  %v774_v42 = vmul.f32 %v1452_v31, %v1674_v34  ;;  %1479 = vpow2.f32 %v1120_v15  ;;  %v503_v34 = vpop.f32.mrf.mxu0 }
 0x101   : > { %v1456_v44 = vpop.eup %1455  ;;  %v790_v49 = vmul.f32 %v1454_v38, %v1677_v35  ;;  %1481 = vpow2.f32 %v1136_v17  ;;  %v1791_v6 = vadd.f32 %v1655_v19, %v503_v34 }
 0x102   : > { %v1458_v50 = vpop.eup %1457  ;;  %v1218_v54 = vpack.c.bf16 %v774_v42, %v773_v41  ;;  %v772_v23 = vmul.f32 %v1456_v44, %v1681_v39  ;;  %1483 = vpow2.f32 %v1123_v18 }
 0x103   : > { %v1460_v57 = vpop.eup %1459  ;;  %v1258_v1 = vpack.c.bf16 %v790_v49, %v789_v45  ;;  %v788_v35 = vmul.f32 %v1458_v50, %v1684_v40  ;;  %1485 = vpow2.f32 %v1139_v20  ;;  %v1125_v18 = vmul.f32 -1.442695, %v1791_v6 }
 0x104   : > { %v1462_v4 = vpop.eup %1461  ;;  %1290 = vst [vmem:[%s1778_s4 + $0x8] sm:$0xff] %v1218_v54   ;;  %v1213_v5 = vpack.c.bf16 %v772_v23, %v771_v53  ;;  %1487 = vpow2.f32 %v1121_v25  ;;  %v777_v16 = vmul.f32 %v1460_v57, %v1690_v46 }
 0x105   : > { %v1464_v39 = vpop.eup %1463  ;;  %1298 = vst [vmem:[%s1778_s4 + $0x48] sm:$0xff] %v1258_v1   ;;  %v1253_v9 = vpack.c.bf16 %v788_v35, %v787_v62  ;;  %1489 = vpow2.f32 %v1137_v26  ;;  %v793_v20 = vmul.f32 %v1462_v4, %v1693_v47 }
 0x106   : > { %v1466_v40 = vpop.eup %1465  ;;  %1214 = vst [vmem:[%s1778_s4] sm:$0xff] %v1213_v5   ;;  %1491 = vpow2.f32 %v1126_v27  ;;  %v775_v26 = vmul.f32 %v1464_v39, %v1697_v51 }
 0x107   : > { %v1468_v12 = vpop.eup %1467  ;;  %1297 = vst [vmem:[%s1778_s4 + $0x40] sm:$0xff] %v1253_v9   ;;  %1493 = vpow2.f32 %v1142_v32  ;;  %v791_v30 = vmul.f32 %v1466_v40, %v1700_v52 }
 0x108   : > { %v1470_v15 = vpop.eup %1469  ;;  %v778_v17 = vmul.f32 %v1468_v12, %v1706_v58  ;;  %1495 = vpow2.f32 %v1124_v28 }
 0x109   : > { %v1472_v19 = vpop.eup %1471  ;;  %v794_v21 = vmul.f32 %v1470_v15, %v1709_v59  ;;  %1497 = vpow2.f32 %v1140_v29 }
 0x10a   : > { %v1474_v25 = vpop.eup %1473  ;;  %v1228_v27 = vpack.c.bf16 %v778_v17, %v777_v16  ;;  %v776_v46 = vmul.f32 %v1472_v19, %v1713_v63  ;;  %1499 = vpow2.f32 %v1127_v11 }
 0x10b   : > { %v1476_v58 = vpop.eup %1475  ;;  %v1268_v31 = vpack.c.bf16 %v794_v21, %v793_v20  ;;  %v792_v47 = vmul.f32 %v1474_v25, %v1716_v0  ;;  %1501 = vpow2.f32 %v1143_v14 }
 0x10c   : > { %v1478_v59 = vpop.eup %1477  ;;  %1292 = vst [vmem:[%s1778_s4 + $0x18] sm:$0xff] %v1228_v27   ;;  %v1223_v32 = vpack.c.bf16 %v776_v46, %v775_v26  ;;  %v685_v38 = vadd.f32 1.0, %v1476_v58  ;;  %1503 = vpow2.f32 %v1125_v18 }
 0x10d   : > { %v1480_v41 = vpop.eup %1479  ;;  %1300 = vst [vmem:[%s1778_s4 + $0x58] sm:$0xff] %v1268_v31   ;;  %v1263_v51 = vpack.c.bf16 %v792_v47, %v791_v30  ;;  %v701_v42 = vadd.f32 1.0, %v1478_v59  ;;  %1505 = vpow2.f32 %v1141_v24 }
 0x10e   : > { %v1482_v63 = vpop.eup %1481  ;;  %1291 = vst [vmem:[%s1778_s4 + $0x10] sm:$0xff] %v1223_v32   ;;  %1507 = vrcp.f32 %v685_v38  ;;  %v683_v44 = vadd.f32 1.0, %v1480_v41 }
 0x10f   : > { %v1484_v52 = vpop.eup %1483  ;;  %1299 = vst [vmem:[%s1778_s4 + $0x50] sm:$0xff] %v1263_v51   ;;  %1509 = vrcp.f32 %v701_v42  ;;  %v699_v0 = vadd.f32 1.0, %v1482_v63 }
 0x110   : > { %v1486_v45 = vpop.eup %1485  ;;  %1511 = vrcp.f32 %v683_v44  ;;  %v686_v49 = vadd.f32 1.0, %v1484_v52 }
 0x111   : > { %v1488_v34 = vpop.eup %1487  ;;  %1513 = vrcp.f32 %v699_v0  ;;  %v702_v50 = vadd.f32 1.0, %v1486_v45 }
 0x112   : > { %v1490_v53 = vpop.eup %1489  ;;  %1515 = vrcp.f32 %v686_v49  ;;  %v684_v54 = vadd.f32 1.0, %v1488_v34 }
 0x113   : > { %v1492_v23 = vpop.eup %1491  ;;  %1517 = vrcp.f32 %v702_v50  ;;  %v700_v56 = vadd.f32 1.0, %v1490_v53 }
 0x114   : > { %v1494_v57 = vpop.eup %1493  ;;  %1519 = vrcp.f32 %v684_v54  ;;  %v689_v62 = vadd.f32 1.0, %v1492_v23 }
 0x115   : > { %v1496_v1 = vpop.eup %1495  ;;  %1521 = vrcp.f32 %v700_v56  ;;  %v705_v35 = vadd.f32 1.0, %v1494_v57 }
 0x116   : > { %v1498_v4 = vpop.eup %1497  ;;  %1523 = vrcp.f32 %v689_v62  ;;  %v687_v5 = vadd.f32 1.0, %v1496_v1 }
 0x117   : > { %v1500_v28 = vpop.eup %1499  ;;  %1525 = vrcp.f32 %v705_v35  ;;  %v703_v39 = vadd.f32 1.0, %v1498_v4 }
 0x118   : > { %v1502_v9 = vpop.eup %1501  ;;  %1527 = vrcp.f32 %v687_v5  ;;  %v690_v29 = vadd.f32 1.0, %v1500_v28 }
 0x119   : > { %v1504_v40 = vpop.eup %1503  ;;  %1529 = vrcp.f32 %v703_v39  ;;  %v706_v11 = vadd.f32 1.0, %v1502_v9 }
 0x11a   : > { %v1506_v12 = vpop.eup %1505  ;;  %1531 = vrcp.f32 %v690_v29  ;;  %v688_v14 = vadd.f32 1.0, %v1504_v40 }
 0x11b   : > { %v1508_v15 = vpop.eup %1507  ;;  %1533 = vrcp.f32 %v706_v11  ;;  %v704_v16 = vadd.f32 1.0, %v1506_v12 }
 0x11c   : > { %v1510_v17 = vpop.eup %1509  ;;  %1535 = vrcp.f32 %v688_v14  ;;  %v781_v24 = vmul.f32 %v1508_v15, %v1722_v36 }
 0x11d   : > { %v1512_v18 = vpop.eup %1511  ;;  %1537 = vrcp.f32 %v704_v16  ;;  %v797_v27 = vmul.f32 %v1510_v17, %v1725_v48 }
 0x11e   : > { %v1514_v19 = vpop.eup %1513  ;;  %v779_v30 = vmul.f32 %v1512_v18, %v1729_v55 }
 0x11f   : > { %v1516_v20 = vpop.eup %1515  ;;  %v795_v32 = vmul.f32 %v1514_v19, %v1732_v60 }
 0x120   : > { %v1518_v21 = vpop.eup %1517  ;;  %v782_v25 = vmul.f32 %v1516_v20, %v1735_v61 }
 0x121   : > { %v1520_v26 = vpop.eup %1519  ;;  %v798_v46 = vmul.f32 %v1518_v21, %v1738_v2 }
 0x122   : > { %v1522_v58 = vpop.eup %1521  ;;  %v1238_v31 = vpack.c.bf16 %v782_v25, %v781_v24  ;;  %v780_v47 = vmul.f32 %v1520_v26, %v1741_v3 }
 0x123   : > { %v1524_v59 = vpop.eup %1523  ;;  %v1278_v36 = vpack.c.bf16 %v798_v46, %v797_v27  ;;  %v796_v61 = vmul.f32 %v1522_v58, %v1744_v7 }
 0x124   : > { %v1526_v38 = vpop.eup %1525  ;;  %1294 = vst [vmem:[%s1778_s4 + $0x28] sm:$0xff] %v1238_v31   ;;  %v1233_v41 = vpack.c.bf16 %v780_v47, %v779_v30  ;;  %v785_v3 = vmul.f32 %v1524_v59, %v1747_v8 }
 0x125   : > { %v1528_v48 = vpop.eup %1527  ;;  %1302 = vst [vmem:[%s1778_s4 + $0x68] sm:$0xff] %v1278_v36   ;;  %v1273_v2 = vpack.c.bf16 %v796_v61, %v795_v32  ;;  %v801_v63 = vmul.f32 %v1526_v38, %v1751_v13 }
 0x126   : > { %v1530_v51 = vpop.eup %1529  ;;  %1293 = vst [vmem:[%s1778_s4 + $0x20] sm:$0xff] %v1233_v41   ;;  %v783_v0 = vmul.f32 %v1528_v48, %v1762_v33 }
 0x127   : > { %v1532_v55 = vpop.eup %1531  ;;  %1301 = vst [vmem:[%s1778_s4 + $0x60] sm:$0xff] %v1273_v2   ;;  %v799_v34 = vmul.f32 %v1530_v51, %v1765_v37 }
 0x128   : > { %v1534_v42 = vpop.eup %1533  ;;  %v786_v60 = vmul.f32 %v1532_v55, %v1770_v43 }
 0x129   : > { %v1536_v7 = vpop.eup %1535  ;;  %v802_v44 = vmul.f32 %v1534_v42, %v1782_v22 }
 0x12a   : > { %v1538_v52 = vpop.eup %1537  ;;  %v1248_v45 = vpack.c.bf16 %v786_v60, %v785_v3  ;;  %v784_v49 = vmul.f32 %v1536_v7, %v1791_v6 }
 0x12b   : > { %v1288_v50 = vpack.c.bf16 %v802_v44, %v801_v63  ;;  %v800_v8 = vmul.f32 %v1538_v52, %v1796_v10 }
 0x12c   : > { %1296 = vst [vmem:[%s1778_s4 + $0x38] sm:$0xff] %v1248_v45   ;;  %v1243_v53 = vpack.c.bf16 %v784_v49, %v783_v0 }
 0x12d   : > { %1304 = vst [vmem:[%s1778_s4 + $0x78] sm:$0xff] %v1288_v50   ;;  %v1283_v43 = vpack.c.bf16 %v800_v8, %v799_v34 }
 0x12e   : > { %1295 = vst [vmem:[%s1778_s4 + $0x30] sm:$0xff] %v1243_v53  }
 0x12f   : > { %1303 = vst [vmem:[%s1778_s4 + $0x70] sm:$0xff] %v1283_v43  }
 0x130 PF: > { %s13_s14 = sadd.s32 1, %s1561_s14   ;;  %s1853_s12 = smov %s1557_s13 }
 0x131   : > { %p10_p5 = scmp.ge.s32.totalorder %s13_s14, 4   ;;  %s1854_s13 = smov %s1856_s15 }
 0x133   :  { %12 = sbr.rel (!%p10_p5) target bundleno = 2 (0x2), region = 68 }

</bundles_post_ra>
